<compile_context>
chip_gen: v5e
topology: v5e:2x2
jax: 0.10.0
libtpu: 0.0.40
codegen_flags: <defaults>
</compile_context>

<pallas_src>
import functools
import math

import jax
import jax.numpy as jnp
from jax.experimental import pallas as pl
from jax.experimental.pallas import tpu as pltpu


# ----------------------------------------------------------------------------
# Fused kernel: BN + ReLU + 2x2 avg-pool + 1x1 conv for one (batch, row-block).
# ----------------------------------------------------------------------------
def _transition_kernel(x_ref, scale_ref, shift_ref, w_ref, o_ref, *, c_pad):
    # x_ref:     (1, TH, OWp, 2*Cp) bf16 -- NHWC row-block with the horizontal pool
    #                                       pair folded into the lane (channel) dim.
    # scale_ref: (1, 2*Cp) f32, shift_ref: (1, 2*Cp) f32   (folded BN affine)
    # w_ref:     (Cp, Co_pad) bf16       (1x1 conv weight, K-major, 0.25 pre-folded)
    # o_ref:     (1, (TH//2)*OWp, Co_pad)
    v = x_ref[0]                                              # (TH, OWp, 2*Cp) bf16
    th = v.shape[0]
    v = v.reshape(th // 2, 2, v.shape[1], v.shape[2])         # split vertical pool pairs (free)
    s = scale_ref[0]
    b = shift_ref[0]
    # BN + ReLU fused with the vertical pool-pair add.  bf16 * f32 promotes to f32,
    # so the elementwise math stays in f32 (required on v5e; fine everywhere).
    t0 = jnp.maximum(v[:, 0] * s + b, 0.0)                    # (TH/2, OWp, 2*Cp) f32
    t1 = jnp.maximum(v[:, 1] * s + b, 0.0)
    hs = t0 + t1                                              # vertical pool sum
    pooled = hs[..., :c_pad] + hs[..., c_pad:]                # horizontal pool, lane-aligned
    # (0.25 avg factor already folded into w_ref)

    a = pooled.reshape(-1, c_pad).astype(w_ref.dtype)         # (TH/2*OWp, Cp) bf16, free (OWp%8==0)
    z = jnp.dot(a, w_ref[...], preferred_element_type=jnp.float32)  # 1x1 conv on MXU, f32 acc
    o_ref[0] = z.astype(o_ref.dtype)                          # lane-dense store (Co_pad%128==0)


# ----------------------------------------------------------------------------
# One-time parameter preparation (hoisted out of the forward path).
# ----------------------------------------------------------------------------
def _round_up(v, m):
    return (v + m - 1) // m * m


def prepare_params(gamma, beta, running_mean, running_var, conv_w, eps=1e-5):
    """Fold eval-mode BN into per-channel scale/shift, pad channels to multiples of 128,
    duplicate for the lane-folded layout, fold the 0.25 avg-pool factor into the weight,
    and pre-transpose / bf16-cast the 1x1 conv weight.  Run once; reused every forward."""
    # TODO(synk): training-mode BatchNorm (batch statistics + running-stat update) is not
    # implemented; this is the standard eval-mode folded form.
    c_out, c_in = int(conv_w.shape[0]), int(conv_w.shape[1])
    scale = gamma / jnp.sqrt(running_var + eps)
    shift = beta - running_mean * scale

    c_pad = _round_up(c_in, 128)
    co_pad = _round_up(c_out, 128)
    if c_pad != c_in:
        scale = jnp.pad(scale, (0, c_pad - c_in))
        shift = jnp.pad(shift, (0, c_pad - c_in))
    # Lane-folded layout: lane index = p*Cp + c (p = horizontal pool tap), so the BN
    # affine just repeats along the lane axis.
    scale2 = jnp.tile(scale, 2).reshape(1, 2 * c_pad).astype(jnp.float32)
    shift2 = jnp.tile(shift, 2).reshape(1, 2 * c_pad).astype(jnp.float32)

    w = conv_w.reshape(c_out, c_in).T * 0.25                  # fold avg-pool 1/4 (exact)
    w = jnp.pad(w, ((0, c_pad - c_in), (0, co_pad - c_out)))  # (Cp, Co_pad), K-major
    w_kn = w.astype(jnp.bfloat16)                             # bf16 MXU operands
    return scale2, shift2, w_kn, c_out


# ----------------------------------------------------------------------------
# Forward pass (equivalent of _Transition.forward)
# ----------------------------------------------------------------------------
@functools.partial(jax.jit, static_argnames=("c_out", "out_dtype", "row_tile"))
def transition_forward(x_nchw, scale2, shift2, w_kn, *, c_out,
                       out_dtype=jnp.float32, row_tile=16):
    N, C, H, W = x_nchw.shape
    c_pad, co_pad = w_kn.shape
    assert C <= c_pad

    # torch AvgPool2d(2,2) floors odd spatial sizes -> crop.
    H2, W2 = (H // 2) * 2, (W // 2) * 2
    oh, ow = H2 // 2, W2 // 2

    # Pad ow to a multiple of 8 sublanes (free pre-matmul flatten); pad H to a multiple
    # of the row tile.  Padded rows/cols produce dead output rows, sliced off below.
    ow_pad = _round_up(max(ow, 1), 8)
    w_pad = 2 * ow_pad
    th = min(row_tile, H2)                      # even (row_tile and H2 are even)
    h_pad = _round_up(H2, th)
    oh_pad = h_pad // 2

    # Single fused glue pass (XLA fuses crop + bf16 cast + transpose + pad + reshape):
    # reads f32 NCHW once, writes bf16 padded NHWC with the horizontal pool pair folded
    # into the lane dimension.
    x = x_nchw[:, :, :H2, :W2].astype(jnp.bfloat16)
    x = jnp.transpose(x, (0, 2, 3, 1))
    x = jnp.pad(x, ((0, 0), (0, h_pad - H2), (0, w_pad - W2), (0, c_pad - C)))
    xf = x.reshape(N, h_pad, ow_pad, 2 * c_pad)

    # VMEM budget: double-buffered in/out blocks + params + headroom for the f32
    # intermediates.  Capped well under v7x's 64 MiB physical VMEM.
    out_itemsize = jnp.dtype(out_dtype).itemsize
    blk_in = th * ow_pad * 2 * c_pad * 2
    blk_out = (th // 2) * ow_pad * co_pad * out_itemsize
    w_bytes = c_pad * co_pad * 2
    sc_bytes = 2 * 2 * c_pad * 4
    vmem_limit = int(min(48 * 1024 * 1024,
                         2 * (blk_in + blk_out + w_bytes + sc_bytes)
                         + 4 * blk_in + (4 << 20)))

    grid = (N, h_pad // th)
    out = pl.pallas_call(
        functools.partial(_transition_kernel, c_pad=c_pad),
        out_shape=jax.ShapeDtypeStruct((N, oh_pad * ow_pad, co_pad), out_dtype),
        grid_spec=pltpu.PrefetchScalarGridSpec(
            num_scalar_prefetch=0,
            grid=grid,
            in_specs=[
                pl.BlockSpec((1, th, ow_pad, 2 * c_pad), lambda n, h: (n, h, 0, 0)),
                pl.BlockSpec((1, 2 * c_pad), lambda n, h: (0, 0)),
                pl.BlockSpec((1, 2 * c_pad), lambda n, h: (0, 0)),
                pl.BlockSpec((c_pad, co_pad), lambda n, h: (0, 0)),
            ],
            out_specs=pl.BlockSpec((1, (th // 2) * ow_pad, co_pad),
                                   lambda n, h: (n, h, 0)),
        ),
        compiler_params=pltpu.CompilerParams(
            dimension_semantics=("parallel", "parallel"),
            vmem_limit_bytes=vmem_limit,
        ),
    )(xf, scale2, shift2, w_kn)

    # Strip spatial/channel padding and return torch-style NCHW.
    y = out.reshape(N, oh_pad, ow_pad, co_pad)[:, :oh, :ow, :c_out]
    return jnp.transpose(y, (0, 3, 1, 2))


# ----------------------------------------------------------------------------
# Pure-JAX f32 reference (BN -> ReLU -> 1x1 conv -> 2x2 avg-pool, torch order)
# ----------------------------------------------------------------------------
def _reference(x, gamma, beta, r_mean, r_var, conv_w, eps=1e-5):
    scale = gamma / jnp.sqrt(r_var + eps)
    shift = beta - r_mean * scale
    t = jnp.maximum(x * scale[None, :, None, None] + shift[None, :, None, None], 0.0)
    y = jnp.einsum("nchw,oc->nohw", t, conv_w[:, :, 0, 0])
    return 0.25 * (y[:, :, 0::2, 0::2] + y[:, :, 0::2, 1::2]
                   + y[:, :, 1::2, 0::2] + y[:, :, 1::2, 1::2])


# ----------------------------------------------------------------------------
# Demo / self-check
# ----------------------------------------------------------------------------
if __name__ == "__main__":
    # TODO(synk): the LRP / grad-cam hooks (_simple_lrp, _grad_cam, ...) are backward-only
    # relevance-propagation paths and are not part of forward().
    key = jax.random.PRNGKey(0)

    def run_case(key, N, C_in, C_out, H, W):
        ks = jax.random.split(key, 6)
        x = jax.random.normal(ks[0], (N, C_in, H, W), dtype=jnp.float32)
        gamma = jax.random.uniform(ks[1], (C_in,), jnp.float32, 0.5, 1.5)
        beta = jax.random.uniform(ks[2], (C_in,), jnp.float32, -0.1, 0.1)
        r_mean = 0.1 * jax.random.normal(ks[3], (C_in,), jnp.float32)
        r_var = jax.random.uniform(ks[4], (C_in,), jnp.float32, 0.5, 1.5)
        bound = 1.0 / math.sqrt(C_in)
        conv_w = jax.random.uniform(ks[5], (C_out, C_in, 1, 1), jnp.float32,
                                    -bound, bound)

        scale2, shift2, w_kn, c_out = prepare_params(gamma, beta, r_mean, r_var, conv_w)
        out = transition_forward(x, scale2, shift2, w_kn, c_out=c_out)
        out = jax.block_until_ready(out)
        assert out.shape == (N, C_out, H // 2, W // 2), out.shape

        ref = _reference(x, gamma, beta, r_mean, r_var, conv_w)
        max_err = float(jnp.max(jnp.abs(out.astype(jnp.float32) - ref)))
        assert max_err < 5e-2, f"max abs error {max_err}"

    # DenseNet transition: channels halve, H/W halve.
    k1, k2 = jax.random.split(key)
    run_case(k1, N=2, C_in=256, C_out=128, H=16, W=16)   # aligned shapes
    run_case(k2, N=2, C_in=160, C_out=80, H=14, W=14)    # non-128 channels, ow=7 -> padded to 8

    print("KERNEL_OK")
</pallas_src>

<mosaic_0001>
module attributes {stable_mosaic.version = 11 : i64} {
  func.func @_transition_kernel(%arg0: i32, %arg1: i32, %arg2: memref<1x16x8x512xbf16, #tpu.memory_space<vmem>>, %arg3: memref<1x512xf32, #tpu.memory_space<vmem>>, %arg4: memref<1x512xf32, #tpu.memory_space<vmem>>, %arg5: memref<256x128xbf16, #tpu.memory_space<vmem>>, %arg6: memref<1x64x128xf32, #tpu.memory_space<vmem>>) attributes {dimension_semantics = [#tpu.dimension_semantics<parallel>, #tpu.dimension_semantics<parallel>], iteration_bounds = array<i64: 2, 1>, scalar_prefetch = 0 : i64, scratch_operands = 0 : i64, tpu.core_type = #tpu.core_type<tc>, window_params = [{transform_indices = @transform_0, window_bounds = array<i64: 1, 16, 8, 512>}, {pipeline_mode = #tpu.pipeline_mode<synchronous>, transform_indices = @transform_1, window_bounds = array<i64: 1, 512>}, {pipeline_mode = #tpu.pipeline_mode<synchronous>, transform_indices = @transform_2, window_bounds = array<i64: 1, 512>}, {pipeline_mode = #tpu.pipeline_mode<synchronous>, transform_indices = @transform_3, window_bounds = array<i64: 256, 128>}, {transform_indices = @transform_4, window_bounds = array<i64: 1, 64, 128>}]} {
    %c0 = arith.constant 0 : index
    %c0_0 = arith.constant 0 : index
    %c0_1 = arith.constant 0 : index
    %c0_2 = arith.constant 0 : index
    %0 = vector.load %arg2[%c0, %c0_0, %c0_1, %c0_2] : memref<1x16x8x512xbf16, #tpu.memory_space<vmem>>, vector<1x16x8x512xbf16>
    %1 = vector.shape_cast %0 : vector<1x16x8x512xbf16> to vector<16x8x512xbf16>
    %2 = vector.shape_cast %1 : vector<16x8x512xbf16> to vector<8x2x8x512xbf16>
    %c0_3 = arith.constant 0 : index
    %c0_4 = arith.constant 0 : index
    %3 = vector.load %arg3[%c0_3, %c0_4] : memref<1x512xf32, #tpu.memory_space<vmem>>, vector<1x512xf32>
    %4 = vector.shape_cast %3 : vector<1x512xf32> to vector<512xf32>
    %c0_5 = arith.constant 0 : index
    %c0_6 = arith.constant 0 : index
    %5 = vector.load %arg4[%c0_5, %c0_6] : memref<1x512xf32, #tpu.memory_space<vmem>>, vector<1x512xf32>
    %6 = vector.shape_cast %5 : vector<1x512xf32> to vector<512xf32>
    %7 = vector.extract_strided_slice %2 {offsets = [0, 0, 0, 0], sizes = [8, 1, 8, 512], strides = [1, 1, 1, 1]} : vector<8x2x8x512xbf16> to vector<8x1x8x512xbf16>
    %8 = vector.shape_cast %7 : vector<8x1x8x512xbf16> to vector<8x8x512xbf16>
    %9 = arith.extf %8 : vector<8x8x512xbf16> to vector<8x8x512xf32>
    %10 = vector.shape_cast %4 : vector<512xf32> to vector<1x1x512xf32>
    %11 = vector.broadcast %10 : vector<1x1x512xf32> to vector<8x8x512xf32>
    %12 = arith.mulf %9, %11 : vector<8x8x512xf32>
    %13 = vector.shape_cast %6 : vector<512xf32> to vector<1x1x512xf32>
    %14 = vector.broadcast %13 : vector<1x1x512xf32> to vector<8x8x512xf32>
    %15 = arith.addf %12, %14 : vector<8x8x512xf32>
    %cst = arith.constant 0.000000e+00 : f32
    %16 = vector.broadcast %cst : f32 to vector<8x8x512xf32>
    %17 = arith.maximumf %15, %16 : vector<8x8x512xf32>
    %18 = vector.extract_strided_slice %2 {offsets = [0, 1, 0, 0], sizes = [8, 1, 8, 512], strides = [1, 1, 1, 1]} : vector<8x2x8x512xbf16> to vector<8x1x8x512xbf16>
    %19 = vector.shape_cast %18 : vector<8x1x8x512xbf16> to vector<8x8x512xbf16>
    %20 = arith.extf %19 : vector<8x8x512xbf16> to vector<8x8x512xf32>
    %21 = vector.shape_cast %4 : vector<512xf32> to vector<1x1x512xf32>
    %22 = vector.broadcast %21 : vector<1x1x512xf32> to vector<8x8x512xf32>
    %23 = arith.mulf %20, %22 : vector<8x8x512xf32>
    %24 = vector.shape_cast %6 : vector<512xf32> to vector<1x1x512xf32>
    %25 = vector.broadcast %24 : vector<1x1x512xf32> to vector<8x8x512xf32>
    %26 = arith.addf %23, %25 : vector<8x8x512xf32>
    %cst_7 = arith.constant 0.000000e+00 : f32
    %27 = vector.broadcast %cst_7 : f32 to vector<8x8x512xf32>
    %28 = arith.maximumf %26, %27 : vector<8x8x512xf32>
    %29 = arith.addf %17, %28 : vector<8x8x512xf32>
    %30 = vector.extract_strided_slice %29 {offsets = [0, 0, 0], sizes = [8, 8, 256], strides = [1, 1, 1]} : vector<8x8x512xf32> to vector<8x8x256xf32>
    %31 = vector.extract_strided_slice %29 {offsets = [0, 0, 256], sizes = [8, 8, 256], strides = [1, 1, 1]} : vector<8x8x512xf32> to vector<8x8x256xf32>
    %32 = arith.addf %30, %31 : vector<8x8x256xf32>
    %33 = vector.shape_cast %32 : vector<8x8x256xf32> to vector<64x256xf32>
    %34 = arith.truncf %33 : vector<64x256xf32> to vector<64x256xbf16>
    %c0_8 = arith.constant 0 : index
    %c0_9 = arith.constant 0 : index
    %35 = vector.load %arg5[%c0_8, %c0_9] : memref<256x128xbf16, #tpu.memory_space<vmem>>, vector<256x128xbf16>
    %cst_10 = arith.constant dense<0.000000e+00> : vector<64x128xf32>
    %36 = tpu.matmul %34, %35, %cst_10 {dimension_numbers = #tpu.dot_dimension_numbers<[1], [0], [0], [1], [0, 0, 1, 1], [], []>} : vector<64x256xbf16>, vector<256x128xbf16>, vector<64x128xf32> -> vector<64x128xf32>
    %c0_11 = arith.constant 0 : index
    %c0_12 = arith.constant 0 : index
    %c0_13 = arith.constant 0 : index
    %37 = vector.load %arg6[%c0_11, %c0_12, %c0_13] : memref<1x64x128xf32, #tpu.memory_space<vmem>>, vector<1x64x128xf32>
    %38 = vector.shape_cast %37 : vector<1x64x128xf32> to vector<64x128xf32>
    %39 = vector.shape_cast %36 : vector<64x128xf32> to vector<1x64x128xf32>
    tpu.vector_store %arg6[%c0_11, %c0_12, %c0_13], %39 {strides = array<i32>} : memref<1x64x128xf32, #tpu.memory_space<vmem>>, vector<1x64x128xf32>,
    return
  }
  func.func @transform_0(%arg0: i32, %arg1: i32) -> (i32, i32, i32, i32) {
    %c0_i32 = arith.constant 0 : i32
    %c0_i32_0 = arith.constant 0 : i32
    %c0_i32_1 = arith.constant 0 : i32
    return %arg0, %arg1, %c0_i32, %c0_i32_0 : i32, i32, i32, i32
  }
  func.func @transform_1(%arg0: i32, %arg1: i32) -> (i32, i32) {
    %c0_i32 = arith.constant 0 : i32
    %c0_i32_0 = arith.constant 0 : i32
    %c0_i32_1 = arith.constant 0 : i32
    return %c0_i32, %c0_i32_0 : i32, i32
  }
  func.func @transform_2(%arg0: i32, %arg1: i32) -> (i32, i32) {
    %c0_i32 = arith.constant 0 : i32
    %c0_i32_0 = arith.constant 0 : i32
    %c0_i32_1 = arith.constant 0 : i32
    return %c0_i32, %c0_i32_0 : i32, i32
  }
  func.func @transform_3(%arg0: i32, %arg1: i32) -> (i32, i32) {
    %c0_i32 = arith.constant 0 : i32
    %c0_i32_0 = arith.constant 0 : i32
    %c0_i32_1 = arith.constant 0 : i32
    return %c0_i32, %c0_i32_0 : i32, i32
  }
  func.func @transform_4(%arg0: i32, %arg1: i32) -> (i32, i32, i32) {
    %c0_i32 = arith.constant 0 : i32
    %c0_i32_0 = arith.constant 0 : i32
    return %arg0, %arg1, %c0_i32 : i32, i32, i32
  }
}

</mosaic_0001>

<bundles_post_ra>
// kernel: transition_forward.1
= control target key start
LH: loop header
LB: loop body
LE: loop exit
PB: predicated region body
PF: predicated region fallthrough
CT: control target
= control target key end

     0   :  { %9 = vsyncpa [#allocation3], 0  ;;  %s1655_s0 = inlined_call_operand.vmem [shape: bf16[2,16,8,512], index: 0, kind: input, shape index: {}]   ;;  %s1656_s1 = inlined_call_operand.vmem [shape: f32[1,512], index: 1, kind: input, shape index: {}]   ;;  %s1657_s2 = inlined_call_operand.vmem [shape: f32[1,512], index: 2, kind: input, shape index: {}]   ;;  %s1658_s3 = inlined_call_operand.vmem [shape: bf16[256,128], index: 3, kind: input, shape index: {}]   ;;  %s1659_s4 = inlined_call_operand.hbm [shape: f32[2,64,128], index: 4, kind: output, shape index: {}]  }
   0x1   :  { %11 = vsyncpa [#allocation3 + $0x1], 0  ;;  %s1163_s15 = smov 0   ;;  %s1165_s16 = smov 0  }
   0x2   :  { %s1167_s17 = smov 0   ;;  %s1169_s18 = smov 0  }
   0x3   :  { %s1171_s19 = smov 0   ;;  %s1173_s20 = smov 0  }
   0x4 LB: > { %s888_s21 = sadd.s32 4294967295, %s1134_s20   ;;  %s889_s22 = sadd.s32 4294967294, %s1134_s20   ;;  %s1134_s20 = sphi %s1173_s20, %s17_s20   ;;  %s1130_s19 = sphi %s1171_s19, %s1666_s19   ;;  %s1126_s18 = sphi %s1169_s18, %s1665_s18   ;;  %s1122_s17 = sphi %s1167_s17, %s1664_s17   ;;  %s1118_s16 = sphi %s1165_s16, %s1663_s16   ;;  %s1114_s15 = sphi %s1163_s15, %s1662_s15  }
   0x5   : > { %s29_s23 = sadd.s32 1, %s1130_s19  ;;  %s129_s24 = sadd.s32 1, %s1122_s17 }
   0x6   : > { %p31_p0 = scmp.ge.s32.totalorder %s29_s23, 2  ;;  %p139_p1 = scmp.ne.s32.totalorder %s1122_s17, %s1118_s16 }
   0x7   : > { %p140_p2 = scmp.eq.s32.totalorder %s888_s21, 1  ;;  %p145_p3 = scmp.ne.s32.totalorder %s1118_s16, %s1114_s15 }
   0x8   : > { %s1668_s23 = smov (%p31_p0, %s29_s23), 0  ;;  %p146_p5 = scmp.eq.s32.totalorder %s889_s22, 1 }
   0x9   : > { %p1203_p4 = por %p140_p2, %p139_p1  ;;  %s124_s26 = ssub.s32 %s1130_s19, %s1668_s23 }
   0xa   : > { %p892_p6 = scmp.ge.s32.totalorder %s1134_s20, 1  ;;  %p127_p7 = scmp.eq.s32.totalorder %s124_s26, 0 }
   0xb   : > { %p1210_p8 = por %p146_p5, %p145_p3  ;;  %p187_p9 = scmp.lt.s32.totalorder %s1134_s20, 3 }
   0xc   : > { %s1216_s28 = scalar_select %p127_p7, %s1122_s17, %s129_s24  }
   0xd   : > { %p188_p10 = pnand %p892_p6, %p187_p9 }
   0xe   : > { %p219_p11 = scmp.lt.s32.totalorder (!%p188_p10), %s1126_s18, 1  ;;  %s982_s21 = sshll.u32 (!%p188_p10), %s1126_s18, 6 }
   0xf   : > { %191 = sbr.rel (%p188_p10) target bundleno = 257 (0x101), region = 36  ;;  %s802_s26 = scalar_lea.hbm (!%p188_p10), %s1659_s4, %s982_s21 }
  0x10   : > { %s805_s5 = sshll.u32 (!%p188_p10), %s802_s26, 4  ;;  %s1076_s10 = scalar_lea.hbm (!%p188_p10), %s1659_s4, 128  ;;  %s806_s5 = int_to_ptr.hbm [resolvable:$true] %s805_s5 }
  0x11   : > { %s1070_s7 = sshra.s32 (!%p188_p10), %s806_s5, 4  ;;  %s1071_s7 = int_to_ptr.hbm [resolvable:$true] %s1070_s7 }
  0x12   : > { %p1077_p1 = scmp.lt.s32.totalorder (!%p188_p10), %s1071_s7, %s1659_s4 }
  0x14   : > { %v973_v0 = vld [vmem:[%s1658_s3 + $0x38] sm:$0xff]  ;;  %v972_v2 = vld [vmem:[%s1658_s3 + $0x30] sm:$0xff]  ;;  %s220_s9 = scalar_select %p219_p11, %s1126_s18, 1  ;;  %v971_v4 = vld [vmem:[%s1658_s3 + $0x28] sm:$0xff] }
  0x15   : > { %v981_v1 = vld [vmem:[%s1658_s3 + $0x78] sm:$0xff]  ;;  %722 = vmatpush.bf16.msra.mxu0 %v973_v0  ;;  %983 = vmatpush.bf16.msra.mxu2 %v973_v0  ;;  %v980_v3 = vld [vmem:[%s1658_s3 + $0x70] sm:$0xff]  ;;  %v979_v5 = vld [vmem:[%s1658_s3 + $0x68] sm:$0xff]  ;;  %s1072_s18 = scalar_lea.hbm %s1071_s7, 64 }
  0x16   : > { %751 = vmatpush.bf16.msra.mxu1 %v981_v1  ;;  %991 = vmatpush.bf16.msra.mxu3 %v981_v1  ;;  %s965_s14 = sshll.u32 %s220_s9, 8  ;;  %v1246_v6 = vld [vmem:[%s1656_s1] sm:$0xf]  ;;  %v969_v53 = vld [vmem:[%s1658_s3 + $0x18] sm:$0xff]  ;;  %p1073_p12 = scmp.ne.s32.totalorder %s1071_s7, %s1072_s18 }
  0x17   : > { %s1241_s29 = scalar_lea.vmem %s1655_s0, %s965_s14  ;;  %v1251_v7 = vld [vmem:[%s1657_s2] sm:$0xf]  ;;  %v1263_v11 = vperm.slane %v1246_v6, 0  ;;  %v1266_v12 = vperm.slane %v1246_v6, 2  ;;  %v977_v58 = vld [vmem:[%s1658_s3 + $0x58] sm:$0xff]  ;;  %p1078_p2 = scmp.lt.s32.totalorder %s1076_s10, %s1072_s18 }
  0x18   : > { %v1254_v8 = vld [vmem:[%s1241_s29] sm:$0xff]  ;;  %v1257_v9 = vld [vmem:[%s1241_s29 + $0x8] sm:$0xff]  ;;  %v1260_v10 = vld [vmem:[%s1241_s29 + $0x10] sm:$0xff]  ;;  %v1269_v13 = vperm.slane %v1251_v7, 0  ;;  %v1283_v19 = vperm.slane %v1251_v7, 2  ;;  %p1074_p13 = pnand %p1073_p12, %p1203_p4 }
  0x19   : > { %723 = vmatpush.bf16.msra.mxu0 %v972_v2  ;;  %984 = vmatpush.bf16.msra.mxu2 %v972_v2  ;;  %v1272_v14 = vld [vmem:[%s1241_s29 + $0x18] sm:$0xff]  ;;  %v1275_v15 = vld [vmem:[%s1241_s29 + $0x20] sm:$0xff]  ;;  %v1278_v16 = vld [vmem:[%s1241_s29 + $0x28] sm:$0xff]  ;;  %v264_v17 = vunpack.c.l.bf16 %v1254_v8  ;;  %v266_v18 = vunpack.c.l.bf16 %v1257_v9  ;;  %v410_v20 = vunpack.c.l.bf16 %v1260_v10  ;;  %v265_v27 = vunpack.c.h.bf16 %v1254_v8  ;;  %p1079_p3 = por %p1078_p2, %p1077_p1 }
  0x1a   : > { %752 = vmatpush.bf16.msra.mxu1 %v980_v3  ;;  %992 = vmatpush.bf16.msra.mxu3 %v980_v3  ;;  %v1287_v21 = vld [vmem:[%s1241_s29 + $0x30] sm:$0xff]  ;;  %v1290_v22 = vld [vmem:[%s1241_s29 + $0x38] sm:$0xff]  ;;  %v268_v23 = vunpack.c.l.bf16 %v1275_v15  ;;  %v270_v24 = vunpack.c.l.bf16 %v1278_v16  ;;  %v412_v25 = vunpack.c.l.bf16 %v1272_v14  ;;  %v1296_v26 = vld [vmem:[%s1241_s29 + $0x80] sm:$0xff]  ;;  %v1417_v8 = vperm.slane %v1251_v7, 3  ;;  %p1075_p0 = pneg %p1074_p13 }
  0x1b   : > { %v305_v28 = vmul.f32 %v1263_v11, %v264_v17  ;;  %v307_v29 = vmul.f32 %v1266_v12, %v266_v18  ;;  %v414_v30 = vunpack.c.l.bf16 %v1287_v21  ;;  %v416_v31 = vunpack.c.l.bf16 %v1290_v22  ;;  %v1304_v32 = vld [vmem:[%s1241_s29 + $0x88] sm:$0xff]  ;;  %v970_v33 = vld [vmem:[%s1658_s3 + $0x20] sm:$0xff]  ;;  %v1341_v61 = vld [vmem:[%s1241_s29 + $0x90] sm:$0xff] }
  0x1c   : > { %v309_v34 = vmul.f32 %v1263_v11, %v268_v23  ;;  %v311_v35 = vmul.f32 %v1266_v12, %v270_v24  ;;  %v442_v36 = vmul.f32 %v410_v20, %v1263_v11  ;;  %v280_v37 = vunpack.c.l.bf16 %v1296_v26  ;;  %v978_v38 = vld [vmem:[%s1658_s3 + $0x60] sm:$0xff]  ;;  %v1328_v48 = vld [vmem:[%s1241_s29 + $0xa8] sm:$0xff]  ;;  %v1346_v2 = vld [vmem:[%s1241_s29 + $0x98] sm:$0xff]  ;;  %p1080_p5 = pnand %p1079_p3, %p1075_p0 }
  0x1d   : > { %724 = vmatpush.bf16.msra.mxu0 %v971_v4  ;;  %985 = vmatpush.bf16.msra.mxu2 %v971_v4  ;;  %v346_v39 = vadd.f32 %v1269_v13, %v305_v28  ;;  %v348_v40 = vadd.f32 %v1283_v19, %v307_v29  ;;  %v444_v41 = vmul.f32 %v412_v25, %v1266_v12  ;;  %v282_v42 = vunpack.c.l.bf16 %v1304_v32  ;;  %v1325_v47 = vld [vmem:[%s1241_s29 + $0xa0] sm:$0xff]  ;;  %v1351_v18 = vld [vmem:[%s1241_s29 + $0xb0] sm:$0xff]  ;;  %v1359_v29 = vld [vmem:[%s1241_s29 + $0xb8] sm:$0xff] }
  0x1e   : > { %753 = vmatpush.bf16.msra.mxu1 %v979_v5  ;;  %993 = vmatpush.bf16.msra.mxu3 %v979_v5  ;;  %v350_v43 = vadd.f32 %v1269_v13, %v309_v34  ;;  %v352_v44 = vadd.f32 %v1283_v19, %v311_v35  ;;  %v446_v45 = vmul.f32 %v414_v30, %v1263_v11  ;;  %v284_v62 = vunpack.c.l.bf16 %v1325_v47  ;;  %v968_v24 = vld [vmem:[%s1658_s3 + $0x10] sm:$0xff] }
  0x1f   : > { %v448_v46 = vmul.f32 %v416_v31, %v1266_v12  ;;  %v378_v49 = vmax.f32 %v346_v39, 0.0  ;;  %v380_v50 = vmax.f32 %v348_v40, 0.0  ;;  %v474_v51 = vadd.f32 %v442_v36, %v1269_v13 }
  0x20   : > { %v476_v52 = vadd.f32 %v444_v41, %v1283_v19  ;;  %v382_v54 = vmax.f32 %v350_v43, 0.0  ;;  %v384_v55 = vmax.f32 %v352_v44, 0.0  ;;  %v478_v56 = vadd.f32 %v446_v45, %v1269_v13 }
  0x21   : > { %725 = vmatpush.bf16.msra.mxu0 %v970_v33  ;;  %986 = vmatpush.bf16.msra.mxu2 %v970_v33  ;;  %v480_v57 = vadd.f32 %v448_v46, %v1283_v19  ;;  %v506_v59 = vmax.f32 %v474_v51, 0.0  ;;  %v286_v63 = vunpack.c.l.bf16 %v1328_v48  ;;  %v321_v3 = vmul.f32 %v1263_v11, %v280_v37  ;;  %v976_v33 = vld [vmem:[%s1658_s3 + $0x50] sm:$0xff]  ;;  %v967_v46 = vld [vmem:[%s1658_s3 + $0x8] sm:$0xff] }
  0x22   : > { %754 = vmatpush.bf16.msra.mxu1 %v978_v38  ;;  %994 = vmatpush.bf16.msra.mxu3 %v978_v38  ;;  %v508_v60 = vmax.f32 %v476_v52, 0.0  ;;  %v510_v0 = vmax.f32 %v478_v56, 0.0  ;;  %v323_v4 = vmul.f32 %v1266_v12, %v282_v42  ;;  %v325_v20 = vmul.f32 %v1263_v11, %v284_v62 }
  0x23   : > { %v512_v1 = vmax.f32 %v480_v57, 0.0  ;;  %v538_v5 = vadd.f32 %v506_v59, %v378_v49  ;;  %v327_v23 = vmul.f32 %v1266_v12, %v286_v63  ;;  %v362_v30 = vadd.f32 %v1269_v13, %v321_v3 }
  0x24   : > { %v540_v17 = vadd.f32 %v508_v60, %v380_v50  ;;  %v542_v25 = vadd.f32 %v510_v0, %v382_v54  ;;  %v426_v31 = vunpack.c.l.bf16 %v1341_v61  ;;  %v364_v35 = vadd.f32 %v1283_v19, %v323_v4 }
  0x25   : > { %726 = vmatpush.bf16.msra.mxu0 %v969_v53  ;;  %987 = vmatpush.bf16.msra.mxu2 %v969_v53  ;;  %v544_v28 = vadd.f32 %v512_v1, %v384_v55  ;;  %v366_v36 = vadd.f32 %v1269_v13, %v325_v20  ;;  %v428_v37 = vunpack.c.l.bf16 %v1346_v2  ;;  %v368_v39 = vadd.f32 %v1283_v19, %v327_v23  ;;  %v975_v53 = vld [vmem:[%s1658_s3 + $0x48] sm:$0xff] }
  0x26   : > { %755 = vmatpush.bf16.msra.mxu1 %v977_v58  ;;  %995 = vmatpush.bf16.msra.mxu3 %v977_v58  ;;  %v1366_v34 = vadd.f32 %v540_v17, %v538_v5  ;;  %v394_v40 = vmax.f32 %v362_v30, 0.0  ;;  %v430_v41 = vunpack.c.l.bf16 %v1351_v18  ;;  %v396_v42 = vmax.f32 %v364_v35, 0.0 }
  0x27   : > { %v1371_v38 = vadd.f32 %v544_v28, %v542_v25  ;;  %v398_v43 = vmax.f32 %v366_v36, 0.0  ;;  %v432_v44 = vunpack.c.l.bf16 %v1359_v29  ;;  %v458_v45 = vmul.f32 %v426_v31, %v1263_v11 }
  0x28   : > { %v400_v50 = vmax.f32 %v368_v39, 0.0  ;;  %v460_v51 = vmul.f32 %v428_v37, %v1266_v12  ;;  %v462_v52 = vmul.f32 %v430_v41, %v1263_v11  ;;  %v267_v56 = vunpack.c.h.bf16 %v1257_v9  ;;  %v966_v9 = vld [vmem:[%s1658_s3] sm:$0xff] }
  0x29   : > { %727 = vmatpush.bf16.msra.mxu0 %v968_v24  ;;  %988 = vmatpush.bf16.msra.mxu2 %v968_v24  ;;  %v586_v49 = vpack.c.bf16 %v1371_v38, %v1366_v34  ;;  %v464_v54 = vmul.f32 %v432_v44, %v1266_v12  ;;  %v490_v55 = vadd.f32 %v458_v45, %v1269_v13  ;;  %v269_v57 = vunpack.c.h.bf16 %v1275_v15 }
  0x2a   : > { %756 = vmatpush.bf16.msra.mxu1 %v976_v33  ;;  %996 = vmatpush.bf16.msra.mxu3 %v976_v33  ;;  %v492_v58 = vadd.f32 %v460_v51, %v1283_v19  ;;  %v494_v59 = vadd.f32 %v462_v52, %v1269_v13  ;;  %v271_v60 = vunpack.c.h.bf16 %v1278_v16  ;;  %v1395_v62 = vperm.slane %v1246_v6, 1 }
  0x2b   : > { %v496_v63 = vadd.f32 %v464_v54, %v1283_v19  ;;  %v522_v0 = vmax.f32 %v490_v55, 0.0  ;;  %v1399_v1 = vperm.slane %v1246_v6, 3  ;;  %v1402_v3 = vperm.slane %v1251_v7, 1  ;;  %v974_v6 = vld [vmem:[%s1658_s3 + $0x40] sm:$0xff] }
  0x2c   : > { %v524_v15 = vmax.f32 %v492_v58, 0.0  ;;  %v526_v16 = vmax.f32 %v494_v59, 0.0  ;;  %v306_v4 = vmul.f32 %v1395_v62, %v265_v27  ;;  %v310_v5 = vmul.f32 %v1395_v62, %v269_v57 }
  0x2d   : > { %728 = vmatpush.bf16.msra.mxu0 %v967_v46  ;;  %989 = vmatpush.bf16.msra.mxu2 %v967_v46  ;;  %v528_v17 = vmax.f32 %v496_v63, 0.0  ;;  %v554_v20 = vadd.f32 %v522_v0, %v394_v40  ;;  %v308_v23 = vmul.f32 %v1399_v1, %v267_v56  ;;  %v312_v24 = vmul.f32 %v1399_v1, %v271_v60 }
  0x2e   : > { %757 = vmatpush.bf16.msra.mxu1 %v975_v53  ;;  %997 = vmatpush.bf16.msra.mxu3 %v975_v53  ;;  %v556_v25 = vadd.f32 %v524_v15, %v396_v42  ;;  %v558_v28 = vadd.f32 %v526_v16, %v398_v43  ;;  %v347_v27 = vadd.f32 %v1402_v3, %v306_v4  ;;  %v411_v33 = vunpack.c.h.bf16 %v1260_v10 }
  0x2f   : > { %v560_v30 = vadd.f32 %v528_v17, %v400_v50  ;;  %v351_v31 = vadd.f32 %v1402_v3, %v310_v5  ;;  %v413_v34 = vunpack.c.h.bf16 %v1272_v14  ;;  %v349_v36 = vadd.f32 %v1417_v8, %v308_v23  ;;  %v1451_v17 = vld [vmem:[%s1241_s29 + $0x48] sm:$0xff] }
  0x30   : > { %v578_v35 = vadd.f32 %v556_v25, %v554_v20  ;;  %v353_v37 = vadd.f32 %v1417_v8, %v312_v24  ;;  %v379_v38 = vmax.f32 %v347_v27, 0.0  ;;  %v415_v40 = vunpack.c.h.bf16 %v1287_v21 }
  0x31   : > { %729 = vmatpush.bf16.msra.mxu0 %v966_v9  ;;  %990 = vmatpush.bf16.msra.mxu2 %v966_v9  ;;  %v580_v7 = vadd.f32 %v560_v30, %v558_v28  ;;  %v383_v39 = vmax.f32 %v351_v31, 0.0  ;;  %v417_v41 = vunpack.c.h.bf16 %v1290_v22  ;;  %v381_v42 = vmax.f32 %v349_v36, 0.0  ;;  %v1455_v28 = vld [vmem:[%s1241_s29 + $0x60] sm:$0xff] }
  0x32   : > { %758 = vmatpush.bf16.msra.mxu1 %v974_v6  ;;  %998 = vmatpush.bf16.msra.mxu3 %v974_v6  ;;  %v385_v10 = vmax.f32 %v353_v37, 0.0  ;;  %v443_v14 = vmul.f32 %v411_v33, %v1395_v62  ;;  %v445_v43 = vmul.f32 %v413_v34, %v1399_v1  ;;  %v447_v45 = vmul.f32 %v415_v40, %v1395_v62  ;;  %v1448_v6 = vld [vmem:[%s1241_s29 + $0x40] sm:$0xff]  ;;  %v1460_v34 = vld [vmem:[%s1241_s29 + $0x68] sm:$0xff] }
  0x33   : > { %v590_v44 = vpack.c.bf16 %v580_v7, %v578_v35  ;;  %v449_v46 = vmul.f32 %v417_v41, %v1399_v1  ;;  %v281_v50 = vunpack.c.h.bf16 %v1296_v26  ;;  %v283_v22 = vunpack.c.h.bf16 %v1304_v32 }
  0x34   : > { %730 = vmatmul.bf16.vlgmr.msra.gmra.mxu0 %v586_v49  ;;  %v475_v51 = vadd.f32 %v443_v14, %v1402_v3  ;;  %v477_v21 = vadd.f32 %v445_v43, %v1417_v8  ;;  %v285_v52 = vunpack.c.h.bf16 %v1325_v47  ;;  %v479_v53 = vadd.f32 %v447_v45, %v1402_v3 }
  0x35   : > { %740 = vmatmul.bf16.vlgmr.msra.gmra.mxu2 %v590_v44  ;;  %v481_v49 = vadd.f32 %v449_v46, %v1417_v8  ;;  %v287_v54 = vunpack.c.h.bf16 %v1328_v48  ;;  %v322_v55 = vmul.f32 %v1395_v62, %v281_v50  ;;  %v324_v57 = vmul.f32 %v1399_v1, %v283_v22  ;;  %v1481_v22 = vld [vmem:[%s1241_s29 + $0x50] sm:$0xff] }
  0x36   : > { %v507_v56 = vmax.f32 %v475_v51, 0.0  ;;  %v509_v26 = vmax.f32 %v477_v21, 0.0  ;;  %v326_v58 = vmul.f32 %v1395_v62, %v285_v52  ;;  %v511_v32 = vmax.f32 %v479_v53, 0.0  ;;  %v1484_v52 = vld [vmem:[%s1241_s29 + $0x58] sm:$0xff] }
  0x37   : > { %v513_v59 = vmax.f32 %v481_v49, 0.0  ;;  %v328_v47 = vmul.f32 %v1399_v1, %v287_v54  ;;  %v363_v60 = vadd.f32 %v1402_v3, %v322_v55  ;;  %v365_v48 = vadd.f32 %v1417_v8, %v324_v57 }
  0x38   : > { %v539_v63 = vadd.f32 %v507_v56, %v379_v38  ;;  %v541_v0 = vadd.f32 %v509_v26, %v381_v42  ;;  %v367_v9 = vadd.f32 %v1402_v3, %v326_v58  ;;  %v543_v15 = vadd.f32 %v511_v32, %v383_v39  ;;  %v1489_v56 = vld [vmem:[%s1241_s29 + $0x70] sm:$0xff]  ;;  %v1492_v26 = vld [vmem:[%s1241_s29 + $0x78] sm:$0xff]  ;;  %v1496_v32 = vld [vmem:[%s1241_s29 + $0xc0] sm:$0xff] }
  0x39   : > { %v545_v16 = vadd.f32 %v513_v59, %v385_v10  ;;  %v369_v4 = vadd.f32 %v1417_v8, %v328_v47  ;;  %v395_v5 = vmax.f32 %v363_v60, 0.0  ;;  %v397_v23 = vmax.f32 %v365_v48, 0.0 }
  0x3a   : > { %v571_v20 = vadd.f32 %v541_v0, %v539_v63  ;;  %v399_v24 = vmax.f32 %v367_v9, 0.0  ;;  %v427_v25 = vunpack.c.h.bf16 %v1341_v61  ;;  %v429_v31 = vunpack.c.h.bf16 %v1346_v2  ;;  %v1499_v0 = vld [vmem:[%s1241_s29 + $0xc8] sm:$0xff] }
  0x3b   : > { %v573_v27 = vadd.f32 %v545_v16, %v543_v15  ;;  %v401_v30 = vmax.f32 %v369_v4, 0.0  ;;  %v431_v33 = vunpack.c.h.bf16 %v1351_v18  ;;  %v433_v35 = vunpack.c.h.bf16 %v1359_v29  ;;  %v1504_v4 = vld [vmem:[%s1241_s29 + $0xe0] sm:$0xff] }
  0x3c   : > { %v459_v36 = vmul.f32 %v427_v25, %v1395_v62  ;;  %v272_v37 = vunpack.c.l.bf16 %v1448_v6  ;;  %v274_v38 = vunpack.c.l.bf16 %v1451_v17  ;;  %v461_v61 = vmul.f32 %v429_v31, %v1399_v1 }
  0x3d   : > { %v587_v7 = vpack.c.bf16 %v573_v27, %v571_v20  ;;  %v463_v39 = vmul.f32 %v431_v33, %v1395_v62  ;;  %v276_v40 = vunpack.c.l.bf16 %v1455_v28  ;;  %v465_v2 = vmul.f32 %v433_v35, %v1399_v1 }
  0x3e   : > { %v491_v18 = vadd.f32 %v459_v36, %v1402_v3  ;;  %v278_v29 = vunpack.c.l.bf16 %v1460_v34  ;;  %v313_v41 = vmul.f32 %v1263_v11, %v272_v37  ;;  %v493_v42 = vadd.f32 %v461_v61, %v1417_v8 }
  0x3f   : > { %759 = vmatmul.bf16.vlgmr.msra.gmra.mxu1 %v587_v7  ;;  %v495_v10 = vadd.f32 %v463_v39, %v1402_v3  ;;  %v315_v14 = vmul.f32 %v1266_v12, %v274_v38  ;;  %v317_v43 = vmul.f32 %v1263_v11, %v276_v40  ;;  %v497_v44 = vadd.f32 %v465_v2, %v1417_v8 }
  0x40   : > { %v523_v45 = vmax.f32 %v491_v18, 0.0  ;;  %v319_v46 = vmul.f32 %v1266_v12, %v278_v29  ;;  %v354_v50 = vadd.f32 %v1269_v13, %v313_v41  ;;  %v525_v51 = vmax.f32 %v493_v42, 0.0 }
  0x41   : > { %v527_v21 = vmax.f32 %v495_v10, 0.0  ;;  %v356_v53 = vadd.f32 %v1283_v19, %v315_v14  ;;  %v358_v49 = vadd.f32 %v1269_v13, %v317_v43  ;;  %v529_v54 = vmax.f32 %v497_v44, 0.0 }
  0x42   : > { %v555_v55 = vadd.f32 %v523_v45, %v395_v5  ;;  %v360_v57 = vadd.f32 %v1283_v19, %v319_v46  ;;  %v386_v58 = vmax.f32 %v354_v50, 0.0  ;;  %v557_v59 = vadd.f32 %v525_v51, %v397_v23  ;;  %v1507_v5 = vld [vmem:[%s1241_s29 + $0xe8] sm:$0xff]  ;;  %v1529_v46 = vld [vmem:[%s1241_s29 + $0xd0] sm:$0xff]  ;;  %v1532_v50 = vld [vmem:[%s1241_s29 + $0xd8] sm:$0xff] }
  0x43   : > { %v559_v47 = vadd.f32 %v527_v21, %v399_v24  ;;  %v388_v60 = vmax.f32 %v356_v53, 0.0  ;;  %v390_v63 = vmax.f32 %v358_v49, 0.0  ;;  %v561_v48 = vadd.f32 %v529_v54, %v401_v30  ;;  %v1537_v54 = vld [vmem:[%s1241_s29 + $0xf0] sm:$0xff] }
  0x44   : > { %v392_v9 = vmax.f32 %v360_v57, 0.0  ;;  %v418_v15 = vunpack.c.l.bf16 %v1481_v22  ;;  %v420_v16 = vunpack.c.l.bf16 %v1484_v52  ;;  %v579_v20 = vadd.f32 %v557_v59, %v555_v55  ;;  %v1540_v55 = vld [vmem:[%s1241_s29 + $0xf8] sm:$0xff]  ;;  %s215_s29 = sand.u32 1, %s1118_s16  }
  0x45   : > { %v422_v25 = vunpack.c.l.bf16 %v1489_v56  ;;  %v424_v23 = vunpack.c.l.bf16 %v1492_v26  ;;  %v288_v24 = vunpack.c.l.bf16 %v1496_v32  ;;  %v581_v27 = vadd.f32 %v561_v48, %v559_v47  ;;  %s893_s13 = sshll.u32 %s215_s29, 6  ;;  %s789_s6 = scalar_lea.sflag [#allocation3], %s215_s29 }
  0x46   : > { %v450_v31 = vmul.f32 %v418_v15, %v1263_v11  ;;  %v452_v30 = vmul.f32 %v420_v16, %v1266_v12  ;;  %v290_v33 = vunpack.c.l.bf16 %v1499_v0  ;;  %v292_v37 = vunpack.c.l.bf16 %v1504_v4  ;;  %s1606_s14 = scalar_lea.vmem [#allocation2], %s893_s13 }
  0x47   : > { %v454_v35 = vmul.f32 %v422_v25, %v1263_v11  ;;  %v456_v36 = vmul.f32 %v424_v23, %v1266_v12  ;;  %v294_v38 = vunpack.c.l.bf16 %v1507_v5  ;;  %v591_v7 = vpack.c.bf16 %v581_v27, %v579_v20  ;;  %s803_s30 = sshll.u32 %s1606_s14, 4  ;;  %s804_s30 = int_to_ptr.vmem [resolvable:$true] %s803_s30 }
  0x48   : > { %v482_v61 = vadd.f32 %v450_v31, %v1269_v13  ;;  %v484_v39 = vadd.f32 %v452_v30, %v1283_v19  ;;  %v329_v40 = vmul.f32 %v1263_v11, %v288_v24  ;;  %v331_v29 = vmul.f32 %v1266_v12, %v290_v33 }
  0x49   : > { %v486_v2 = vadd.f32 %v454_v35, %v1269_v13  ;;  %v488_v18 = vadd.f32 %v456_v36, %v1283_v19  ;;  %v333_v41 = vmul.f32 %v1263_v11, %v292_v37  ;;  %769 = vmatmul.bf16.vlgmr.msra.gmra.mxu3 %v591_v7  ;;  %v335_v14 = vmul.f32 %v1266_v12, %v294_v38 }
  0x4a   : > { %v514_v42 = vmax.f32 %v482_v61, 0.0  ;;  %v516_v10 = vmax.f32 %v484_v39, 0.0  ;;  %v370_v43 = vadd.f32 %v1269_v13, %v329_v40  ;;  %v372_v51 = vadd.f32 %v1283_v19, %v331_v29 }
  0x4b   : > { %v518_v44 = vmax.f32 %v486_v2, 0.0  ;;  %v520_v45 = vmax.f32 %v488_v18, 0.0  ;;  %v374_v21 = vadd.f32 %v1269_v13, %v333_v41  ;;  %v376_v57 = vadd.f32 %v1283_v19, %v335_v14 }
  0x4c   : > { %v546_v53 = vadd.f32 %v514_v42, %v386_v58  ;;  %v548_v49 = vadd.f32 %v516_v10, %v388_v60  ;;  %v402_v59 = vmax.f32 %v370_v43, 0.0  ;;  %v404_v15 = vmax.f32 %v372_v51, 0.0 }
  0x4d   : > { %v550_v47 = vadd.f32 %v518_v44, %v390_v63  ;;  %v552_v48 = vadd.f32 %v520_v45, %v392_v9  ;;  %v406_v16 = vmax.f32 %v374_v21, 0.0  ;;  %v408_v25 = vmax.f32 %v376_v57, 0.0 }
  0x4e   : > { %v574_v20 = vadd.f32 %v548_v49, %v546_v53  ;;  %v434_v23 = vunpack.c.l.bf16 %v1529_v46  ;;  %v436_v24 = vunpack.c.l.bf16 %v1532_v50  ;;  %v438_v58 = vunpack.c.l.bf16 %v1537_v54 }
  0x4f   : > { %v576_v27 = vadd.f32 %v552_v48, %v550_v47  ;;  %v440_v60 = vunpack.c.l.bf16 %v1540_v55  ;;  %v273_v31 = vunpack.c.h.bf16 %v1448_v6  ;;  %v275_v9 = vunpack.c.h.bf16 %v1451_v17 }
  0x50   : > { %v466_v30 = vmul.f32 %v434_v23, %v1263_v11  ;;  %v468_v63 = vmul.f32 %v436_v24, %v1266_v12  ;;  %v277_v33 = vunpack.c.h.bf16 %v1455_v28  ;;  %v470_v36 = vmul.f32 %v438_v58, %v1263_v11 }
  0x51   : > { %v588_v35 = vpack.c.bf16 %v576_v27, %v574_v20  ;;  %v472_v37 = vmul.f32 %v440_v60, %v1266_v12  ;;  %v279_v38 = vunpack.c.h.bf16 %v1460_v34  ;;  %v314_v6 = vmul.f32 %v1395_v62, %v273_v31 }
  0x52   : > { %v498_v7 = vadd.f32 %v466_v30, %v1269_v13  ;;  %v500_v61 = vadd.f32 %v468_v63, %v1283_v19  ;;  %v316_v39 = vmul.f32 %v1399_v1, %v275_v9  ;;  %v502_v17 = vadd.f32 %v470_v36, %v1269_v13 }
  0x53   : > { %735 = vmatmul.bf16.gmra.mxu0 %v588_v35  ;;  %v504_v28 = vadd.f32 %v472_v37, %v1283_v19  ;;  %v318_v40 = vmul.f32 %v1395_v62, %v277_v33  ;;  %v320_v11 = vmul.f32 %v1399_v1, %v279_v38  ;;  %v355_v34 = vadd.f32 %v1402_v3, %v314_v6 }
  0x54   : > { %v530_v12 = vmax.f32 %v498_v7, 0.0  ;;  %v532_v2 = vmax.f32 %v500_v61, 0.0  ;;  %v357_v18 = vadd.f32 %v1417_v8, %v316_v39  ;;  %v534_v29 = vmax.f32 %v502_v17, 0.0 }
  0x55   : > { %v536_v41 = vmax.f32 %v504_v28, 0.0  ;;  %v359_v42 = vadd.f32 %v1402_v3, %v318_v40  ;;  %v361_v13 = vadd.f32 %v1417_v8, %v320_v11  ;;  %v387_v43 = vmax.f32 %v355_v34, 0.0 }
  0x56   : > { %v562_v10 = vadd.f32 %v530_v12, %v402_v59  ;;  %v564_v14 = vadd.f32 %v532_v2, %v404_v15  ;;  %v566_v19 = vadd.f32 %v534_v29, %v406_v16  ;;  %v389_v45 = vmax.f32 %v357_v18, 0.0 }
  0x57   : > { %v568_v44 = vadd.f32 %v536_v41, %v408_v25  ;;  %v391_v51 = vmax.f32 %v359_v42, 0.0  ;;  %v419_v53 = vunpack.c.h.bf16 %v1481_v22  ;;  %v421_v49 = vunpack.c.h.bf16 %v1484_v52 }
  0x58   : > { %v582_v21 = vadd.f32 %v564_v14, %v562_v10  ;;  %v423_v57 = vunpack.c.h.bf16 %v1489_v56  ;;  %v425_v48 = vunpack.c.h.bf16 %v1492_v26  ;;  %v289_v59 = vunpack.c.h.bf16 %v1496_v32 }
  0x59   : > { %v584_v47 = vadd.f32 %v568_v44, %v566_v19  ;;  %v291_v15 = vunpack.c.h.bf16 %v1499_v0  ;;  %v451_v20 = vmul.f32 %v419_v53, %v1395_v62  ;;  %v453_v16 = vmul.f32 %v421_v49, %v1399_v1 }
  0x5a   : > { %v455_v25 = vmul.f32 %v423_v57, %v1395_v62  ;;  %v293_v23 = vunpack.c.h.bf16 %v1504_v4  ;;  %v457_v52 = vmul.f32 %v425_v48, %v1399_v1  ;;  %v295_v56 = vunpack.c.h.bf16 %v1507_v5 }
  0x5b   : > { %v592_v22 = vpack.c.bf16 %v584_v47, %v582_v21  ;;  %v330_v24 = vmul.f32 %v1395_v62, %v289_v59  ;;  %v483_v26 = vadd.f32 %v451_v20, %v1402_v3  ;;  %v485_v32 = vadd.f32 %v453_v16, %v1417_v8 }
  0x5c   : > { %v487_v0 = vadd.f32 %v455_v25, %v1402_v3  ;;  %v332_v27 = vmul.f32 %v1399_v1, %v291_v15  ;;  %v393_v58 = vmax.f32 %v361_v13, 0.0  ;;  %v489_v60 = vadd.f32 %v457_v52, %v1417_v8 }
  0x5d   : > { %745 = vmatmul.bf16.gmra.mxu2 %v592_v22  ;;  %v334_v4 = vmul.f32 %v1395_v62, %v293_v23  ;;  %v336_v31 = vmul.f32 %v1399_v1, %v295_v56  ;;  %v515_v30 = vmax.f32 %v483_v26, 0.0  ;;  %v517_v5 = vmax.f32 %v485_v32, 0.0 }
  0x5e   : > { %v519_v63 = vmax.f32 %v487_v0, 0.0  ;;  %v521_v9 = vmax.f32 %v489_v60, 0.0  ;;  %v371_v33 = vadd.f32 %v1402_v3, %v330_v24  ;;  %v373_v38 = vadd.f32 %v1417_v8, %v332_v27 }
  0x5f   : > { %v547_v35 = vadd.f32 %v515_v30, %v387_v43  ;;  %v549_v36 = vadd.f32 %v517_v5, %v389_v45  ;;  %v375_v61 = vadd.f32 %v1402_v3, %v334_v4  ;;  %v377_v6 = vadd.f32 %v1417_v8, %v336_v31 }
  0x60   : > { %v551_v37 = vadd.f32 %v519_v63, %v391_v51  ;;  %v553_v7 = vadd.f32 %v521_v9, %v393_v58  ;;  %v435_v39 = vunpack.c.h.bf16 %v1529_v46  ;;  %v437_v28 = vunpack.c.h.bf16 %v1532_v50 }
  0x61   : > { %v575_v17 = vadd.f32 %v549_v36, %v547_v35  ;;  %v439_v40 = vunpack.c.h.bf16 %v1537_v54  ;;  %v441_v11 = vunpack.c.h.bf16 %v1540_v55  ;;  %v403_v34 = vmax.f32 %v371_v33, 0.0 }
  0x62   : > { %v577_v12 = vadd.f32 %v553_v7, %v551_v37  ;;  %v467_v2 = vmul.f32 %v435_v39, %v1395_v62  ;;  %v469_v18 = vmul.f32 %v437_v28, %v1399_v1  ;;  %v405_v10 = vmax.f32 %v373_v38, 0.0 }
  0x63   : > { %v471_v29 = vmul.f32 %v439_v40, %v1395_v62  ;;  %v473_v41 = vmul.f32 %v441_v11, %v1399_v1  ;;  %v407_v46 = vmax.f32 %v375_v61, 0.0  ;;  %v409_v50 = vmax.f32 %v377_v6, 0.0 }
  0x64   : > { %v589_v42 = vpack.c.bf16 %v577_v12, %v575_v17  ;;  %v499_v14 = vadd.f32 %v467_v2, %v1402_v3  ;;  %v501_v54 = vadd.f32 %v469_v18, %v1417_v8 }
  0x65   : > { %v503_v55 = vadd.f32 %v471_v29, %v1402_v3  ;;  %v505_v13 = vadd.f32 %v473_v41, %v1417_v8 }
  0x66   : > { %764 = vmatmul.bf16.gmra.mxu1 %v589_v42  ;;  %v531_v43 = vmax.f32 %v499_v14, 0.0  ;;  %v533_v19 = vmax.f32 %v501_v54, 0.0 }
  0x67   : > { %v535_v62 = vmax.f32 %v503_v55, 0.0  ;;  %v537_v44 = vmax.f32 %v505_v13, 0.0 }
  0x68   : > { %v563_v1 = vadd.f32 %v531_v43, %v403_v34  ;;  %v565_v45 = vadd.f32 %v533_v19, %v405_v10 }
  0x69   : > { %v567_v51 = vadd.f32 %v535_v62, %v407_v46  ;;  %v569_v21 = vadd.f32 %v537_v44, %v409_v50 }
  0x6a   : > { %v583_v53 = vadd.f32 %v565_v45, %v563_v1 }
  0x6b   : > { %v585_v49 = vadd.f32 %v569_v21, %v567_v51 }
  0x6d   : > { %v593_v57 = vpack.c.bf16 %v585_v49, %v583_v53 }
  0x6f   : > { %774 = vmatmul.bf16.gmra.mxu3 %v593_v57 }
  0xb1   : > { %v731_v47 = vpop.f32.mrf.mxu0 }
  0xb8   : > { %v741_v20 = vpop.f32.mrf.mxu2 }
  0xb9   : > { %v733_v48 = vpop.f32.mrf.mxu0 }
  0xbc   : > { %v760_v3 = vpop.f32.mrf.mxu1 }
  0xbd   : > { %v761_v8 = vadd.f32 %v760_v3, %v731_v47 }
  0xbf   : > { %780 = vst [vmem:[%s1606_s14] sm:$0xff] %v761_v8 }
  0xc0   : > { %v743_v23 = vpop.f32.mrf.mxu2 }
  0xc4   : > { %v762_v59 = vpop.f32.mrf.mxu1 }
  0xc5   : > { %v763_v15 = vadd.f32 %v762_v59, %v733_v48 }
  0xc7   : > { %781 = vst [vmem:[%s1606_s14 + $0x8] sm:$0xff] %v763_v15 }
  0xcc   : > { %v770_v16 = vpop.f32.mrf.mxu3 }
  0xcd   : > { %v771_v25 = vadd.f32 %v770_v16, %v741_v20 }
  0xcf   : > { %784 = vst [vmem:[%s1606_s14 + $0x20] sm:$0xff] %v771_v25 }
  0xd0   : > { %v736_v56 = vpop.f32.mrf.mxu0 }
  0xd4   : > { %v772_v22 = vpop.f32.mrf.mxu3 }
  0xd5   : > { %v773_v52 = vadd.f32 %v772_v22, %v743_v23 }
  0xd7   : > { %785 = vst [vmem:[%s1606_s14 + $0x28] sm:$0xff] %v773_v52 }
  0xd8   : > { %v738_v32 = vpop.f32.mrf.mxu0 }
  0xe0   : > { %v746_v58 = vpop.f32.mrf.mxu2 }
  0xe3   : > { %v765_v24 = vpop.f32.mrf.mxu1 }
  0xe4   : > { %v766_v26 = vadd.f32 %v765_v24, %v736_v56 }
  0xe6   : > { %782 = vst [vmem:[%s1606_s14 + $0x10] sm:$0xff] %v766_v26 }
  0xe8   : > { %v748_v31 = vpop.f32.mrf.mxu2 }
  0xeb   : > { %v767_v0 = vpop.f32.mrf.mxu1 }
  0xec   : > { %v768_v27 = vadd.f32 %v767_v0, %v738_v32 }
  0xee   : > { %783 = vst [vmem:[%s1606_s14 + $0x18] sm:$0xff] %v768_v27 }
  0xf2   : > { %v775_v60 = vpop.f32.mrf.mxu3 }
  0xf3   : > { %v776_v4 = vadd.f32 %v775_v60, %v746_v58 }
  0xf5   : > { %786 = vst [vmem:[%s1606_s14 + $0x30] sm:$0xff] %v776_v4 }
  0xfa   : > { %v777_v30 = vpop.f32.mrf.mxu3 }
  0xfb   : > { %v778_v5 = vadd.f32 %v777_v30, %v748_v31 }
  0xfd   : > { %787 = vst [vmem:[%s1606_s14 + $0x38] sm:$0xff] %v778_v5 }
  0xfe   : > { %1083 = shalt.err (!%p1080_p5)
}
  0xff   : > { %s1136_s29 = smov 128   ;;  %s1137_s13 = smov 8  }
 0x100   : > { %999 = dma.vmem_to_hbm [thread:$0]  (%p1203_p4), %s804_s30, 1024, %s806_s5, %s789_s6, %s1136_s29, %s1136_s29, %s1137_s13  }
 0x101 PF: > { %p1005_p6 = scmp.ge.s32.totalorder %s1134_s20, 2  ;;  %s820_s14 = sand.u32 1, %s1114_s15  }
 0x102   : > { %s821_s21 = scalar_lea.sflag [#allocation3], %s820_s14 }
 0x103   : > { %p1002_p7 = pnand %p1005_p6, %p1210_p8 }
 0x105   : > { %p1003_p9 = pneg %p1002_p7 }
 0x107   : > { %1109 = dma.done.wait (%p1003_p9), %s821_s21, 1024  }
 0x108   : > { %1111 = vsyncadd (%p1003_p9), %s821_s21, 4294966272  ;;  %s17_s20 = sadd.s32 1, %s1134_s20   ;;  %s1662_s15 = smov %s1118_s16 }
 0x109   : > { %p14_p10 = scmp.ge.s32.totalorder %s17_s20, 4   ;;  %s1663_s16 = smov %s1122_s17 }
 0x10a   : > { %s1664_s17 = smov %s1216_s28  ;;  %s1665_s18 = smov %s1130_s19 }
 0x10b   : > { %s1666_s19 = smov %s1668_s23  ;;  %16 = sbr.rel (!%p14_p10) target bundleno = 4 (0x4), region = 71 }
 0x110   :  { %827 = vsyncpa [#allocation3], 1 }
 0x111   :  { %829 = vsyncpa [#allocation3 + $0x1], 1 }

</bundles_post_ra>
